<compile_context>
chip_gen: v7x
topology: tpu7x:2x2x1
jax: 0.10.0
libtpu: 0.0.40
codegen_flags: <defaults>
</compile_context>

<pallas_src>
import functools

import numpy as np
import jax
import jax.numpy as jnp
from jax import lax
from jax.experimental import pallas as pl
from jax.experimental.pallas import tpu as pltpu


# ------------------------------ fused kernel --------------------------------

def _consistency_kernel(idx_ref, ent_ref, ht_ref, o_ref, *, L, T, M, K):
    # idx_ref : (B, K) int32 in SMEM (scalar-prefetched gold entity indices)
    # ent_ref : (1, Ne, Dc) entity-query logits, Dc = 3L + T  (start|end|part|type)
    # ht_ref  : (1, 2M, Dc) relation-query logits, rows 0:M = head, M:2M = tail
    # o_ref   : (1, 1, 3) f32 -> [ent_head_num, ent_tail_num, headtail_ent_num]
    b = pl.program_id(0)
    Ne = ent_ref.shape[1]
    f32 = jnp.float32
    NEG = f32(-1e30)
    bounds = ((0, L), (L, 2 * L), (2 * L, 3 * L), (3 * L, 3 * L + T))

    def seg_log_softmax(x):
        """log_softmax applied independently on each [s, e) lane segment."""
        x = x.astype(f32)
        lanes = lax.broadcasted_iota(jnp.int32, x.shape, 1)
        masks = [((lanes >= s) & (lanes < e)) for (s, e) in bounds]
        maskf = [m.astype(f32) for m in masks]
        mx = jnp.zeros_like(x)
        for m, mf in zip(masks, maskf):
            mx = mx + mf * jnp.max(jnp.where(m, x, NEG), axis=-1, keepdims=True)
        z = x - mx
        ez = jnp.exp(z)
        lse = jnp.zeros_like(x)
        for mf in maskf:
            lse = lse + mf * jnp.log(jnp.sum(mf * ez, axis=-1, keepdims=True))
        return z - lse

    # ---- gather the K gold entity-query rows (one-hot matmul, no gather op) --
    row = lax.broadcasted_iota(jnp.int32, (K, Ne), 0)
    col = lax.broadcasted_iota(jnp.int32, (K, Ne), 1)
    onehot_ent = jnp.zeros((K, Ne), f32)
    for k in range(K):                                   # K is tiny & static
        onehot_ent = onehot_ent + ((row == k) & (col == idx_ref[b, k])).astype(f32)
    ent_sel_logits = lax.dot_general(onehot_ent, ent_ref[0].astype(f32),
                                     (((1,), (0,)), ((), ())),
                                     preferred_element_type=f32)        # (K, Dc)

    # ---- per-distribution log-probs ------------------------------------------
    ent_lp = seg_log_softmax(ent_sel_logits)                            # (K, Dc)
    ht_lp = seg_log_softmax(ht_ref[0])                                  # (2M, Dc)
    head_lp = ht_lp[:M]
    tail_lp = ht_lp[M:]
    p_ht = jnp.exp(ht_lp)
    p_head = p_ht[:M]
    p_tail = p_ht[M:]
    p_ent = jnp.exp(ent_lp)

    # ---- matcher --------------------------------------------------------------
    # argmin_i sum_d exp(t_d)*(t_d - s_id)  ==  argmax_i  exp(t) . s_i
    # (self term is constant per target row; first-index tie break preserved).
    def cross(p_t, s):
        return lax.dot_general(p_t, s, (((1,), (1,)), ((), ())),
                               preferred_element_type=f32)

    def argmax_last(x):                          # -> (R, 1) int32, first max wins
        mx = jnp.max(x, axis=-1, keepdims=True)
        ii = lax.broadcasted_iota(jnp.int32, x.shape, 1)
        return jnp.min(jnp.where(x == mx, ii, x.shape[-1]),
                       axis=-1, keepdims=True)

    def select_rows(match_idx, table):           # (R,1) indices into table rows
        ii = lax.broadcasted_iota(jnp.int32,
                                  (match_idx.shape[0], table.shape[0]), 1)
        oh = (ii == match_idx).astype(f32)
        return lax.dot_general(oh, table, (((1,), (0,)), ((), ())),
                               preferred_element_type=f32)

    ent_head_match = argmax_last(cross(p_head, ent_lp))      # (M,1) in [0, K)
    ent_tail_match = argmax_last(cross(p_tail, ent_lp))      # (M,1)
    ht_ent_match = argmax_last(cross(p_ent, ht_lp))          # (K,1) in [0, 2M)

    head_sel_ent = select_rows(ent_head_match, ent_lp)       # (M, Dc)
    tail_sel_ent = select_rows(ent_tail_match, ent_lp)       # (M, Dc)
    ent_sel_ht = select_rows(ht_ent_match, ht_lp)            # (K, Dc)

    # ---- KL(target || input) numerators ('batchmean' division done outside) --
    num_head = jnp.sum(p_head * (head_lp - head_sel_ent))
    num_tail = jnp.sum(p_tail * (tail_lp - tail_sel_ent))
    num_ht = jnp.sum(p_ent * (ent_lp - ent_sel_ht))

    lane3 = lax.broadcasted_iota(jnp.int32, (1, 3), 1)
    o_ref[0] = (jnp.where(lane3 == 0, num_head, 0.0)
                + jnp.where(lane3 == 1, num_tail, 0.0)
                + jnp.where(lane3 == 2, num_ht, 0.0))


# ------------------------------- wrapper -------------------------------------

def consistency_loss(ent_output, rel_output, ent_indices):
    """ConsistencyLoss.forward with the greedy argmin-KL matcher, one Pallas call.

    ent_indices: (B, K) int32 — gold entity-query indices per sample (the `i`
    half of PyTorch's `ent_indices` tuples); a fixed K > 0 keeps shapes static.
    """
    # TODO(synk): ragged / empty per-sample index lists (valid_sample_index
    # filtering) and a Hungarian Ent_HeadTail_Matcher are dynamic-shape /
    # host-side and are not expressible as a static-shape Pallas kernel.
    es = ent_output['ent_start_logits']
    ee = ent_output['ent_end_logits']
    ep = jnp.squeeze(ent_output['ent_part_logits'], -1)
    et = ent_output['ent_type_logits'][..., :-1]
    hs = rel_output['head_start_logits']
    he = rel_output['head_end_logits']
    hp = jnp.squeeze(rel_output['head_part_logits'], -1)
    hty = rel_output['head_type_logits']
    ts_ = rel_output['tail_start_logits']
    te = rel_output['tail_end_logits']
    tp = jnp.squeeze(rel_output['tail_part_logits'], -1)
    tty = rel_output['tail_type_logits']

    B, Ne, L = es.shape
    _, M, _ = hs.shape
    T = et.shape[-1]
    K = ent_indices.shape[-1]
    Dc = 3 * L + T

    # Concatenate the 4 distributions along the probability (lane) axis and the
    # head/tail query slots along the query axis — trivial XLA copies that let
    # the kernel run lane-dense matmuls / reductions with zero in-kernel concat.
    ent_cat = jnp.concatenate([es, ee, ep, et], axis=-1)               # (B, Ne, Dc)
    head_cat = jnp.concatenate([hs, he, hp, hty], axis=-1)             # (B, M, Dc)
    tail_cat = jnp.concatenate([ts_, te, tp, tty], axis=-1)            # (B, M, Dc)
    ht_cat = jnp.concatenate([head_cat, tail_cat], axis=1)             # (B, 2M, Dc)

    kernel = functools.partial(_consistency_kernel, L=L, T=T, M=M, K=K)

    grid_spec = pltpu.PrefetchScalarGridSpec(
        num_scalar_prefetch=1,
        grid=(B,),
        in_specs=[pl.BlockSpec((1, Ne, Dc), lambda b, idx: (b, 0, 0)),
                  pl.BlockSpec((1, 2 * M, Dc), lambda b, idx: (b, 0, 0))],
        out_specs=pl.BlockSpec((1, 1, 3), lambda b, idx: (b, 0, 0)),
    )

    nums = pl.pallas_call(
        kernel,
        grid_spec=grid_spec,
        out_shape=jax.ShapeDtypeStruct((B, 1, 3), jnp.float32),
        compiler_params=pltpu.CompilerParams(
            dimension_semantics=("parallel",)),        # 2-TC sharding on v7x
    )(ent_indices.astype(jnp.int32), ent_cat, ht_cat)

    totals = jnp.sum(nums[:, 0, :], axis=0)                            # (3,)
    return ((totals[0] + totals[1]) / jnp.float32(B * M)
            + totals[2] / jnp.float32(B * K))


# --------------------------- pure-JAX reference ------------------------------

def consistency_loss_ref(ent_output, rel_output, ent_indices):
    """Pure-JAX reference with identical (greedy argmin-KL matcher) semantics."""
    ls = lambda x: jax.nn.log_softmax(x.astype(jnp.float32), axis=-1)
    gather = lambda x: jnp.take_along_axis(x, ent_indices[:, :, None], axis=1)

    ent_pack = (gather(ls(ent_output['ent_start_logits'])),
                gather(ls(ent_output['ent_end_logits'])),
                gather(ls(jnp.squeeze(ent_output['ent_part_logits'], -1))),
                gather(ls(ent_output['ent_type_logits'][..., :-1])))
    head_pack = (ls(rel_output['head_start_logits']),
                 ls(rel_output['head_end_logits']),
                 ls(jnp.squeeze(rel_output['head_part_logits'], -1)),
                 ls(rel_output['head_type_logits']))
    tail_pack = (ls(rel_output['tail_start_logits']),
                 ls(rel_output['tail_end_logits']),
                 ls(jnp.squeeze(rel_output['tail_part_logits'], -1)),
                 ls(rel_output['tail_type_logits']))

    def cost(src_pack, tgt_pack):   # cost[b, j, i] = sum_dist KL(tgt_j || src_i)
        def kl(t, s):
            pt = jnp.exp(t)
            return jnp.sum(pt[:, :, None, :] * (t[:, :, None, :] - s[:, None, :, :]),
                           axis=-1)
        return sum(kl(t, s) for t, s in zip(tgt_pack, src_pack))

    sel = lambda x, idx: jnp.take_along_axis(x, idx[:, :, None], axis=1)
    kld = lambda inp, tgt: jnp.sum(jnp.exp(tgt) * (tgt - inp)) / (tgt.shape[0] * tgt.shape[1])

    ent_head_match = jnp.argmin(cost(ent_pack, head_pack), axis=-1)    # (B, M)
    ent_tail_match = jnp.argmin(cost(ent_pack, tail_pack), axis=-1)    # (B, M)
    ht_pack = tuple(jnp.concatenate((h, t), axis=1)
                    for h, t in zip(head_pack, tail_pack))             # (B, 2M, .)
    headtail_ent_match = jnp.argmin(cost(ht_pack, ent_pack), axis=-1)  # (B, K)

    ent_head_loss = sum(kld(sel(e, ent_head_match), h)
                        for e, h in zip(ent_pack, head_pack))
    ent_tail_loss = sum(kld(sel(e, ent_tail_match), t)
                        for e, t in zip(ent_pack, tail_pack))
    ht_ent_loss = sum(kld(sel(ht, headtail_ent_match), e)
                      for ht, e in zip(ht_pack, ent_pack))
    return ent_head_loss + ent_tail_loss + ht_ent_loss


# ---------------------------------- main --------------------------------------

if __name__ == "__main__":
    B, Ne, M, K, L, T = 2, 8, 8, 3, 16, 4
    key = jax.random.PRNGKey(0)
    ks = iter(jax.random.split(key, 16))

    ent_output = {
        'ent_start_logits': jax.random.normal(next(ks), (B, Ne, L), jnp.float32),
        'ent_end_logits':   jax.random.normal(next(ks), (B, Ne, L), jnp.float32),
        'ent_part_logits':  jax.random.normal(next(ks), (B, Ne, L, 1), jnp.float32),
        'ent_type_logits':  jax.random.normal(next(ks), (B, Ne, T + 1), jnp.float32),
    }
    rel_output = {
        'head_start_logits': jax.random.normal(next(ks), (B, M, L), jnp.float32),
        'head_end_logits':   jax.random.normal(next(ks), (B, M, L), jnp.float32),
        'head_part_logits':  jax.random.normal(next(ks), (B, M, L, 1), jnp.float32),
        'tail_start_logits': jax.random.normal(next(ks), (B, M, L), jnp.float32),
        'tail_end_logits':   jax.random.normal(next(ks), (B, M, L), jnp.float32),
        'tail_part_logits':  jax.random.normal(next(ks), (B, M, L, 1), jnp.float32),
        'head_type_logits':  jax.random.normal(next(ks), (B, M, T), jnp.float32),
        'tail_type_logits':  jax.random.normal(next(ks), (B, M, T), jnp.float32),
    }
    # Gold entity-query indices per sample (K per sample, all samples valid).
    ent_indices = jnp.array([[0, 3, 5], [1, 2, 7]], dtype=jnp.int32)

    loss = jax.jit(consistency_loss)(ent_output, rel_output, ent_indices)
    loss = jax.block_until_ready(loss)

    loss_ref = consistency_loss_ref(ent_output, rel_output, ent_indices)
    np.testing.assert_allclose(np.asarray(loss), np.asarray(loss_ref),
                               rtol=5e-3, atol=5e-3)
    print("KERNEL_OK")
</pallas_src>

<mosaic_0001>
module attributes {stable_mosaic.version = 11 : i64} {
  func.func @_consistency_kernel(%arg0: i32, %arg1: memref<2x3xi32, #tpu.memory_space<smem>>, %arg2: memref<1x8x52xf32, #tpu.memory_space<vmem>>, %arg3: memref<1x16x52xf32, #tpu.memory_space<vmem>>, %arg4: memref<1x1x3xf32, #tpu.memory_space<vmem>>) attributes {dimension_semantics = [#tpu.dimension_semantics<parallel>], iteration_bounds = array<i64: 2>, scalar_prefetch = 1 : i64, scratch_operands = 0 : i64, tpu.core_type = #tpu.core_type<tc>, window_params = [{transform_indices = @transform_0, window_bounds = array<i64: 1, 8, 52>}, {transform_indices = @transform_1, window_bounds = array<i64: 1, 16, 52>}, {transform_indices = @transform_2, window_bounds = array<i64: 1, 1, 3>}]} {
    %0 = tpu.iota {dimensions = array<i32: 0>} : vector<3x8xi32>
    %1 = tpu.iota {dimensions = array<i32: 1>} : vector<3x8xi32>
    %cst = arith.constant 0.000000e+00 : f32
    %2 = vector.broadcast %cst : f32 to vector<3x8xf32>
    %c0_i32 = arith.constant 0 : i32
    %3 = vector.broadcast %c0_i32 : i32 to vector<3x8xi32>
    %4 = arith.cmpi eq, %0, %3 : vector<3x8xi32>
    %5 = arith.index_cast %arg0 : i32 to index
    %c0 = arith.constant 0 : index
    %6 = memref.load %arg1[%5, %c0] : memref<2x3xi32, #tpu.memory_space<smem>>
    %7 = vector.broadcast %6 : i32 to vector<3x8xi32>
    %8 = arith.cmpi eq, %1, %7 : vector<3x8xi32>
    %9 = arith.andi %4, %8 : vector<3x8xi1>
    %10 = arith.extui %9 : vector<3x8xi1> to vector<3x8xi32>
    %11 = arith.sitofp %10 : vector<3x8xi32> to vector<3x8xf32>
    %12 = arith.addf %2, %11 : vector<3x8xf32>
    %c1_i32 = arith.constant 1 : i32
    %13 = vector.broadcast %c1_i32 : i32 to vector<3x8xi32>
    %14 = arith.cmpi eq, %0, %13 : vector<3x8xi32>
    %15 = arith.index_cast %arg0 : i32 to index
    %c1 = arith.constant 1 : index
    %16 = memref.load %arg1[%15, %c1] : memref<2x3xi32, #tpu.memory_space<smem>>
    %17 = vector.broadcast %16 : i32 to vector<3x8xi32>
    %18 = arith.cmpi eq, %1, %17 : vector<3x8xi32>
    %19 = arith.andi %14, %18 : vector<3x8xi1>
    %20 = arith.extui %19 : vector<3x8xi1> to vector<3x8xi32>
    %21 = arith.sitofp %20 : vector<3x8xi32> to vector<3x8xf32>
    %22 = arith.addf %12, %21 : vector<3x8xf32>
    %c2_i32 = arith.constant 2 : i32
    %23 = vector.broadcast %c2_i32 : i32 to vector<3x8xi32>
    %24 = arith.cmpi eq, %0, %23 : vector<3x8xi32>
    %25 = arith.index_cast %arg0 : i32 to index
    %c2 = arith.constant 2 : index
    %26 = memref.load %arg1[%25, %c2] : memref<2x3xi32, #tpu.memory_space<smem>>
    %27 = vector.broadcast %26 : i32 to vector<3x8xi32>
    %28 = arith.cmpi eq, %1, %27 : vector<3x8xi32>
    %29 = arith.andi %24, %28 : vector<3x8xi1>
    %30 = arith.extui %29 : vector<3x8xi1> to vector<3x8xi32>
    %31 = arith.sitofp %30 : vector<3x8xi32> to vector<3x8xf32>
    %32 = arith.addf %22, %31 : vector<3x8xf32>
    %c0_0 = arith.constant 0 : index
    %c0_1 = arith.constant 0 : index
    %c0_2 = arith.constant 0 : index
    %33 = vector.load %arg2[%c0_0, %c0_1, %c0_2] : memref<1x8x52xf32, #tpu.memory_space<vmem>>, vector<1x8x52xf32>
    %34 = vector.shape_cast %33 : vector<1x8x52xf32> to vector<8x52xf32>
    %cst_3 = arith.constant dense<0.000000e+00> : vector<3x52xf32>
    %35 = tpu.matmul %32, %34, %cst_3 {dimension_numbers = #tpu.dot_dimension_numbers<[1], [0], [0], [1], [0, 0, 1, 1], [], []>} : vector<3x8xf32>, vector<8x52xf32>, vector<3x52xf32> -> vector<3x52xf32>
    %36 = tpu.iota {dimensions = array<i32: 1>} : vector<3x52xi32>
    %c0_i32_4 = arith.constant 0 : i32
    %37 = vector.broadcast %c0_i32_4 : i32 to vector<3x52xi32>
    %38 = arith.cmpi sge, %36, %37 : vector<3x52xi32>
    %c16_i32 = arith.constant 16 : i32
    %39 = vector.broadcast %c16_i32 : i32 to vector<3x52xi32>
    %40 = arith.cmpi slt, %36, %39 : vector<3x52xi32>
    %41 = arith.andi %38, %40 : vector<3x52xi1>
    %c16_i32_5 = arith.constant 16 : i32
    %42 = vector.broadcast %c16_i32_5 : i32 to vector<3x52xi32>
    %43 = arith.cmpi sge, %36, %42 : vector<3x52xi32>
    %c32_i32 = arith.constant 32 : i32
    %44 = vector.broadcast %c32_i32 : i32 to vector<3x52xi32>
    %45 = arith.cmpi slt, %36, %44 : vector<3x52xi32>
    %46 = arith.andi %43, %45 : vector<3x52xi1>
    %c32_i32_6 = arith.constant 32 : i32
    %47 = vector.broadcast %c32_i32_6 : i32 to vector<3x52xi32>
    %48 = arith.cmpi sge, %36, %47 : vector<3x52xi32>
    %c48_i32 = arith.constant 48 : i32
    %49 = vector.broadcast %c48_i32 : i32 to vector<3x52xi32>
    %50 = arith.cmpi slt, %36, %49 : vector<3x52xi32>
    %51 = arith.andi %48, %50 : vector<3x52xi1>
    %c48_i32_7 = arith.constant 48 : i32
    %52 = vector.broadcast %c48_i32_7 : i32 to vector<3x52xi32>
    %53 = arith.cmpi sge, %36, %52 : vector<3x52xi32>
    %c52_i32 = arith.constant 52 : i32
    %54 = vector.broadcast %c52_i32 : i32 to vector<3x52xi32>
    %55 = arith.cmpi slt, %36, %54 : vector<3x52xi32>
    %56 = arith.andi %53, %55 : vector<3x52xi1>
    %57 = arith.extui %41 : vector<3x52xi1> to vector<3x52xi32>
    %58 = arith.sitofp %57 : vector<3x52xi32> to vector<3x52xf32>
    %59 = arith.extui %46 : vector<3x52xi1> to vector<3x52xi32>
    %60 = arith.sitofp %59 : vector<3x52xi32> to vector<3x52xf32>
    %61 = arith.extui %51 : vector<3x52xi1> to vector<3x52xi32>
    %62 = arith.sitofp %61 : vector<3x52xi32> to vector<3x52xf32>
    %63 = arith.extui %56 : vector<3x52xi1> to vector<3x52xi32>
    %64 = arith.sitofp %63 : vector<3x52xi32> to vector<3x52xf32>
    %cst_8 = arith.constant 0.000000e+00 : f32
    %65 = vector.broadcast %cst_8 : f32 to vector<3x52xf32>
    %cst_9 = arith.constant -1.000000e+30 : f32
    %66 = vector.broadcast %cst_9 : f32 to vector<3x52xf32>
    %67 = arith.select %41, %35, %66 : vector<3x52xi1>, vector<3x52xf32>
    %cst_10 = arith.constant dense<0xFF800000> : vector<3xf32>
    %68 = vector.multi_reduction <maximumf>, %67, %cst_10 [1] : vector<3x52xf32> to vector<3xf32>
    %69 = vector.shape_cast %68 : vector<3xf32> to vector<3x1xf32>
    %70 = vector.broadcast %69 : vector<3x1xf32> to vector<3x52xf32>
    %71 = arith.mulf %58, %70 : vector<3x52xf32>
    %72 = arith.addf %65, %71 : vector<3x52xf32>
    %cst_11 = arith.constant -1.000000e+30 : f32
    %73 = vector.broadcast %cst_11 : f32 to vector<3x52xf32>
    %74 = arith.select %46, %35, %73 : vector<3x52xi1>, vector<3x52xf32>
    %cst_12 = arith.constant dense<0xFF800000> : vector<3xf32>
    %75 = vector.multi_reduction <maximumf>, %74, %cst_12 [1] : vector<3x52xf32> to vector<3xf32>
    %76 = vector.shape_cast %75 : vector<3xf32> to vector<3x1xf32>
    %77 = vector.broadcast %76 : vector<3x1xf32> to vector<3x52xf32>
    %78 = arith.mulf %60, %77 : vector<3x52xf32>
    %79 = arith.addf %72, %78 : vector<3x52xf32>
    %cst_13 = arith.constant -1.000000e+30 : f32
    %80 = vector.broadcast %cst_13 : f32 to vector<3x52xf32>
    %81 = arith.select %51, %35, %80 : vector<3x52xi1>, vector<3x52xf32>
    %cst_14 = arith.constant dense<0xFF800000> : vector<3xf32>
    %82 = vector.multi_reduction <maximumf>, %81, %cst_14 [1] : vector<3x52xf32> to vector<3xf32>
    %83 = vector.shape_cast %82 : vector<3xf32> to vector<3x1xf32>
    %84 = vector.broadcast %83 : vector<3x1xf32> to vector<3x52xf32>
    %85 = arith.mulf %62, %84 : vector<3x52xf32>
    %86 = arith.addf %79, %85 : vector<3x52xf32>
    %cst_15 = arith.constant -1.000000e+30 : f32
    %87 = vector.broadcast %cst_15 : f32 to vector<3x52xf32>
    %88 = arith.select %56, %35, %87 : vector<3x52xi1>, vector<3x52xf32>
    %cst_16 = arith.constant dense<0xFF800000> : vector<3xf32>
    %89 = vector.multi_reduction <maximumf>, %88, %cst_16 [1] : vector<3x52xf32> to vector<3xf32>
    %90 = vector.shape_cast %89 : vector<3xf32> to vector<3x1xf32>
    %91 = vector.broadcast %90 : vector<3x1xf32> to vector<3x52xf32>
    %92 = arith.mulf %64, %91 : vector<3x52xf32>
    %93 = arith.addf %86, %92 : vector<3x52xf32>
    %94 = arith.subf %35, %93 : vector<3x52xf32>
    %95 = math.exp %94 : vector<3x52xf32>
    %cst_17 = arith.constant 0.000000e+00 : f32
    %96 = vector.broadcast %cst_17 : f32 to vector<3x52xf32>
    %97 = arith.mulf %58, %95 : vector<3x52xf32>
    %cst_18 = arith.constant dense<0.000000e+00> : vector<3xf32>
    %98 = vector.multi_reduction <add>, %97, %cst_18 [1] : vector<3x52xf32> to vector<3xf32>
    %99 = vector.shape_cast %98 : vector<3xf32> to vector<3x1xf32>
    %100 = math.log %99 : vector<3x1xf32>
    %101 = vector.broadcast %100 : vector<3x1xf32> to vector<3x52xf32>
    %102 = arith.mulf %58, %101 : vector<3x52xf32>
    %103 = arith.addf %96, %102 : vector<3x52xf32>
    %104 = arith.mulf %60, %95 : vector<3x52xf32>
    %cst_19 = arith.constant dense<0.000000e+00> : vector<3xf32>
    %105 = vector.multi_reduction <add>, %104, %cst_19 [1] : vector<3x52xf32> to vector<3xf32>
    %106 = vector.shape_cast %105 : vector<3xf32> to vector<3x1xf32>
    %107 = math.log %106 : vector<3x1xf32>
    %108 = vector.broadcast %107 : vector<3x1xf32> to vector<3x52xf32>
    %109 = arith.mulf %60, %108 : vector<3x52xf32>
    %110 = arith.addf %103, %109 : vector<3x52xf32>
    %111 = arith.mulf %62, %95 : vector<3x52xf32>
    %cst_20 = arith.constant dense<0.000000e+00> : vector<3xf32>
    %112 = vector.multi_reduction <add>, %111, %cst_20 [1] : vector<3x52xf32> to vector<3xf32>
    %113 = vector.shape_cast %112 : vector<3xf32> to vector<3x1xf32>
    %114 = math.log %113 : vector<3x1xf32>
    %115 = vector.broadcast %114 : vector<3x1xf32> to vector<3x52xf32>
    %116 = arith.mulf %62, %115 : vector<3x52xf32>
    %117 = arith.addf %110, %116 : vector<3x52xf32>
    %118 = arith.mulf %64, %95 : vector<3x52xf32>
    %cst_21 = arith.constant dense<0.000000e+00> : vector<3xf32>
    %119 = vector.multi_reduction <add>, %118, %cst_21 [1] : vector<3x52xf32> to vector<3xf32>
    %120 = vector.shape_cast %119 : vector<3xf32> to vector<3x1xf32>
    %121 = math.log %120 : vector<3x1xf32>
    %122 = vector.broadcast %121 : vector<3x1xf32> to vector<3x52xf32>
    %123 = arith.mulf %64, %122 : vector<3x52xf32>
    %124 = arith.addf %117, %123 : vector<3x52xf32>
    %125 = arith.subf %94, %124 : vector<3x52xf32>
    %c0_22 = arith.constant 0 : index
    %c0_23 = arith.constant 0 : index
    %c0_24 = arith.constant 0 : index
    %126 = vector.load %arg3[%c0_22, %c0_23, %c0_24] : memref<1x16x52xf32, #tpu.memory_space<vmem>>, vector<1x16x52xf32>
    %127 = vector.shape_cast %126 : vector<1x16x52xf32> to vector<16x52xf32>
    %128 = tpu.iota {dimensions = array<i32: 1>} : vector<16x52xi32>
    %c0_i32_25 = arith.constant 0 : i32
    %129 = vector.broadcast %c0_i32_25 : i32 to vector<16x52xi32>
    %130 = arith.cmpi sge, %128, %129 : vector<16x52xi32>
    %c16_i32_26 = arith.constant 16 : i32
    %131 = vector.broadcast %c16_i32_26 : i32 to vector<16x52xi32>
    %132 = arith.cmpi slt, %128, %131 : vector<16x52xi32>
    %133 = arith.andi %130, %132 : vector<16x52xi1>
    %c16_i32_27 = arith.constant 16 : i32
    %134 = vector.broadcast %c16_i32_27 : i32 to vector<16x52xi32>
    %135 = arith.cmpi sge, %128, %134 : vector<16x52xi32>
    %c32_i32_28 = arith.constant 32 : i32
    %136 = vector.broadcast %c32_i32_28 : i32 to vector<16x52xi32>
    %137 = arith.cmpi slt, %128, %136 : vector<16x52xi32>
    %138 = arith.andi %135, %137 : vector<16x52xi1>
    %c32_i32_29 = arith.constant 32 : i32
    %139 = vector.broadcast %c32_i32_29 : i32 to vector<16x52xi32>
    %140 = arith.cmpi sge, %128, %139 : vector<16x52xi32>
    %c48_i32_30 = arith.constant 48 : i32
    %141 = vector.broadcast %c48_i32_30 : i32 to vector<16x52xi32>
    %142 = arith.cmpi slt, %128, %141 : vector<16x52xi32>
    %143 = arith.andi %140, %142 : vector<16x52xi1>
    %c48_i32_31 = arith.constant 48 : i32
    %144 = vector.broadcast %c48_i32_31 : i32 to vector<16x52xi32>
    %145 = arith.cmpi sge, %128, %144 : vector<16x52xi32>
    %c52_i32_32 = arith.constant 52 : i32
    %146 = vector.broadcast %c52_i32_32 : i32 to vector<16x52xi32>
    %147 = arith.cmpi slt, %128, %146 : vector<16x52xi32>
    %148 = arith.andi %145, %147 : vector<16x52xi1>
    %149 = arith.extui %133 : vector<16x52xi1> to vector<16x52xi32>
    %150 = arith.sitofp %149 : vector<16x52xi32> to vector<16x52xf32>
    %151 = arith.extui %138 : vector<16x52xi1> to vector<16x52xi32>
    %152 = arith.sitofp %151 : vector<16x52xi32> to vector<16x52xf32>
    %153 = arith.extui %143 : vector<16x52xi1> to vector<16x52xi32>
    %154 = arith.sitofp %153 : vector<16x52xi32> to vector<16x52xf32>
    %155 = arith.extui %148 : vector<16x52xi1> to vector<16x52xi32>
    %156 = arith.sitofp %155 : vector<16x52xi32> to vector<16x52xf32>
    %cst_33 = arith.constant 0.000000e+00 : f32
    %157 = vector.broadcast %cst_33 : f32 to vector<16x52xf32>
    %cst_34 = arith.constant -1.000000e+30 : f32
    %158 = vector.broadcast %cst_34 : f32 to vector<16x52xf32>
    %159 = arith.select %133, %127, %158 : vector<16x52xi1>, vector<16x52xf32>
    %cst_35 = arith.constant dense<0xFF800000> : vector<16xf32>
    %160 = vector.multi_reduction <maximumf>, %159, %cst_35 [1] : vector<16x52xf32> to vector<16xf32>
    %161 = vector.shape_cast %160 : vector<16xf32> to vector<16x1xf32>
    %162 = vector.broadcast %161 : vector<16x1xf32> to vector<16x52xf32>
    %163 = arith.mulf %150, %162 : vector<16x52xf32>
    %164 = arith.addf %157, %163 : vector<16x52xf32>
    %cst_36 = arith.constant -1.000000e+30 : f32
    %165 = vector.broadcast %cst_36 : f32 to vector<16x52xf32>
    %166 = arith.select %138, %127, %165 : vector<16x52xi1>, vector<16x52xf32>
    %cst_37 = arith.constant dense<0xFF800000> : vector<16xf32>
    %167 = vector.multi_reduction <maximumf>, %166, %cst_37 [1] : vector<16x52xf32> to vector<16xf32>
    %168 = vector.shape_cast %167 : vector<16xf32> to vector<16x1xf32>
    %169 = vector.broadcast %168 : vector<16x1xf32> to vector<16x52xf32>
    %170 = arith.mulf %152, %169 : vector<16x52xf32>
    %171 = arith.addf %164, %170 : vector<16x52xf32>
    %cst_38 = arith.constant -1.000000e+30 : f32
    %172 = vector.broadcast %cst_38 : f32 to vector<16x52xf32>
    %173 = arith.select %143, %127, %172 : vector<16x52xi1>, vector<16x52xf32>
    %cst_39 = arith.constant dense<0xFF800000> : vector<16xf32>
    %174 = vector.multi_reduction <maximumf>, %173, %cst_39 [1] : vector<16x52xf32> to vector<16xf32>
    %175 = vector.shape_cast %174 : vector<16xf32> to vector<16x1xf32>
    %176 = vector.broadcast %175 : vector<16x1xf32> to vector<16x52xf32>
    %177 = arith.mulf %154, %176 : vector<16x52xf32>
    %178 = arith.addf %171, %177 : vector<16x52xf32>
    %cst_40 = arith.constant -1.000000e+30 : f32
    %179 = vector.broadcast %cst_40 : f32 to vector<16x52xf32>
    %180 = arith.select %148, %127, %179 : vector<16x52xi1>, vector<16x52xf32>
    %cst_41 = arith.constant dense<0xFF800000> : vector<16xf32>
    %181 = vector.multi_reduction <maximumf>, %180, %cst_41 [1] : vector<16x52xf32> to vector<16xf32>
    %182 = vector.shape_cast %181 : vector<16xf32> to vector<16x1xf32>
    %183 = vector.broadcast %182 : vector<16x1xf32> to vector<16x52xf32>
    %184 = arith.mulf %156, %183 : vector<16x52xf32>
    %185 = arith.addf %178, %184 : vector<16x52xf32>
    %186 = arith.subf %127, %185 : vector<16x52xf32>
    %187 = math.exp %186 : vector<16x52xf32>
    %cst_42 = arith.constant 0.000000e+00 : f32
    %188 = vector.broadcast %cst_42 : f32 to vector<16x52xf32>
    %189 = arith.mulf %150, %187 : vector<16x52xf32>
    %cst_43 = arith.constant dense<0.000000e+00> : vector<16xf32>
    %190 = vector.multi_reduction <add>, %189, %cst_43 [1] : vector<16x52xf32> to vector<16xf32>
    %191 = vector.shape_cast %190 : vector<16xf32> to vector<16x1xf32>
    %192 = math.log %191 : vector<16x1xf32>
    %193 = vector.broadcast %192 : vector<16x1xf32> to vector<16x52xf32>
    %194 = arith.mulf %150, %193 : vector<16x52xf32>
    %195 = arith.addf %188, %194 : vector<16x52xf32>
    %196 = arith.mulf %152, %187 : vector<16x52xf32>
    %cst_44 = arith.constant dense<0.000000e+00> : vector<16xf32>
    %197 = vector.multi_reduction <add>, %196, %cst_44 [1] : vector<16x52xf32> to vector<16xf32>
    %198 = vector.shape_cast %197 : vector<16xf32> to vector<16x1xf32>
    %199 = math.log %198 : vector<16x1xf32>
    %200 = vector.broadcast %199 : vector<16x1xf32> to vector<16x52xf32>
    %201 = arith.mulf %152, %200 : vector<16x52xf32>
    %202 = arith.addf %195, %201 : vector<16x52xf32>
    %203 = arith.mulf %154, %187 : vector<16x52xf32>
    %cst_45 = arith.constant dense<0.000000e+00> : vector<16xf32>
    %204 = vector.multi_reduction <add>, %203, %cst_45 [1] : vector<16x52xf32> to vector<16xf32>
    %205 = vector.shape_cast %204 : vector<16xf32> to vector<16x1xf32>
    %206 = math.log %205 : vector<16x1xf32>
    %207 = vector.broadcast %206 : vector<16x1xf32> to vector<16x52xf32>
    %208 = arith.mulf %154, %207 : vector<16x52xf32>
    %209 = arith.addf %202, %208 : vector<16x52xf32>
    %210 = arith.mulf %156, %187 : vector<16x52xf32>
    %cst_46 = arith.constant dense<0.000000e+00> : vector<16xf32>
    %211 = vector.multi_reduction <add>, %210, %cst_46 [1] : vector<16x52xf32> to vector<16xf32>
    %212 = vector.shape_cast %211 : vector<16xf32> to vector<16x1xf32>
    %213 = math.log %212 : vector<16x1xf32>
    %214 = vector.broadcast %213 : vector<16x1xf32> to vector<16x52xf32>
    %215 = arith.mulf %156, %214 : vector<16x52xf32>
    %216 = arith.addf %209, %215 : vector<16x52xf32>
    %217 = arith.subf %186, %216 : vector<16x52xf32>
    %218 = vector.extract_strided_slice %217 {offsets = [0, 0], sizes = [8, 52], strides = [1, 1]} : vector<16x52xf32> to vector<8x52xf32>
    %219 = vector.extract_strided_slice %217 {offsets = [8, 0], sizes = [8, 52], strides = [1, 1]} : vector<16x52xf32> to vector<8x52xf32>
    %220 = math.exp %217 : vector<16x52xf32>
    %221 = vector.extract_strided_slice %220 {offsets = [0, 0], sizes = [8, 52], strides = [1, 1]} : vector<16x52xf32> to vector<8x52xf32>
    %222 = vector.extract_strided_slice %220 {offsets = [8, 0], sizes = [8, 52], strides = [1, 1]} : vector<16x52xf32> to vector<8x52xf32>
    %223 = math.exp %125 : vector<3x52xf32>
    %cst_47 = arith.constant dense<0.000000e+00> : vector<8x3xf32>
    %224 = tpu.matmul %221, %125, %cst_47 {dimension_numbers = #tpu.dot_dimension_numbers<[1], [1], [0], [0], [0, 0, 1, 0], [], []>} : vector<8x52xf32>, vector<3x52xf32>, vector<8x3xf32> -> vector<8x3xf32>
    %cst_48 = arith.constant dense<0xFF800000> : vector<8xf32>
    %225 = vector.multi_reduction <maximumf>, %224, %cst_48 [1] : vector<8x3xf32> to vector<8xf32>
    %226 = vector.shape_cast %225 : vector<8xf32> to vector<8x1xf32>
    %227 = tpu.iota {dimensions = array<i32: 1>} : vector<8x3xi32>
    %228 = vector.broadcast %226 : vector<8x1xf32> to vector<8x3xf32>
    %229 = arith.cmpf oeq, %224, %228 : vector<8x3xf32>
    %c3_i32 = arith.constant 3 : i32
    %230 = vector.broadcast %c3_i32 : i32 to vector<8x3xi32>
    %231 = arith.select %229, %227, %230 : vector<8x3xi1>, vector<8x3xi32>
    %cst_49 = arith.constant dense<2147483647> : vector<8xi32>
    %232 = vector.multi_reduction <minsi>, %231, %cst_49 [1] : vector<8x3xi32> to vector<8xi32>
    %233 = vector.shape_cast %232 : vector<8xi32> to vector<8x1xi32>
    %cst_50 = arith.constant dense<0.000000e+00> : vector<8x3xf32>
    %234 = tpu.matmul %222, %125, %cst_50 {dimension_numbers = #tpu.dot_dimension_numbers<[1], [1], [0], [0], [0, 0, 1, 0], [], []>} : vector<8x52xf32>, vector<3x52xf32>, vector<8x3xf32> -> vector<8x3xf32>
    %cst_51 = arith.constant dense<0xFF800000> : vector<8xf32>
    %235 = vector.multi_reduction <maximumf>, %234, %cst_51 [1] : vector<8x3xf32> to vector<8xf32>
    %236 = vector.shape_cast %235 : vector<8xf32> to vector<8x1xf32>
    %237 = tpu.iota {dimensions = array<i32: 1>} : vector<8x3xi32>
    %238 = vector.broadcast %236 : vector<8x1xf32> to vector<8x3xf32>
    %239 = arith.cmpf oeq, %234, %238 : vector<8x3xf32>
    %c3_i32_52 = arith.constant 3 : i32
    %240 = vector.broadcast %c3_i32_52 : i32 to vector<8x3xi32>
    %241 = arith.select %239, %237, %240 : vector<8x3xi1>, vector<8x3xi32>
    %cst_53 = arith.constant dense<2147483647> : vector<8xi32>
    %242 = vector.multi_reduction <minsi>, %241, %cst_53 [1] : vector<8x3xi32> to vector<8xi32>
    %243 = vector.shape_cast %242 : vector<8xi32> to vector<8x1xi32>
    %cst_54 = arith.constant dense<0.000000e+00> : vector<3x16xf32>
    %244 = tpu.matmul %223, %217, %cst_54 {dimension_numbers = #tpu.dot_dimension_numbers<[1], [1], [0], [0], [0, 0, 1, 0], [], []>} : vector<3x52xf32>, vector<16x52xf32>, vector<3x16xf32> -> vector<3x16xf32>
    %cst_55 = arith.constant dense<0xFF800000> : vector<3xf32>
    %245 = vector.multi_reduction <maximumf>, %244, %cst_55 [1] : vector<3x16xf32> to vector<3xf32>
    %246 = vector.shape_cast %245 : vector<3xf32> to vector<3x1xf32>
    %247 = tpu.iota {dimensions = array<i32: 1>} : vector<3x16xi32>
    %248 = vector.broadcast %246 : vector<3x1xf32> to vector<3x16xf32>
    %249 = arith.cmpf oeq, %244, %248 : vector<3x16xf32>
    %c16_i32_56 = arith.constant 16 : i32
    %250 = vector.broadcast %c16_i32_56 : i32 to vector<3x16xi32>
    %251 = arith.select %249, %247, %250 : vector<3x16xi1>, vector<3x16xi32>
    %cst_57 = arith.constant dense<2147483647> : vector<3xi32>
    %252 = vector.multi_reduction <minsi>, %251, %cst_57 [1] : vector<3x16xi32> to vector<3xi32>
    %253 = vector.shape_cast %252 : vector<3xi32> to vector<3x1xi32>
    %254 = tpu.iota {dimensions = array<i32: 1>} : vector<8x3xi32>
    %255 = vector.broadcast %233 : vector<8x1xi32> to vector<8x3xi32>
    %256 = arith.cmpi eq, %254, %255 : vector<8x3xi32>
    %257 = arith.extui %256 : vector<8x3xi1> to vector<8x3xi32>
    %258 = arith.sitofp %257 : vector<8x3xi32> to vector<8x3xf32>
    %cst_58 = arith.constant dense<0.000000e+00> : vector<8x52xf32>
    %259 = tpu.matmul %258, %125, %cst_58 {dimension_numbers = #tpu.dot_dimension_numbers<[1], [0], [0], [1], [0, 0, 1, 1], [], []>} : vector<8x3xf32>, vector<3x52xf32>, vector<8x52xf32> -> vector<8x52xf32>
    %260 = tpu.iota {dimensions = array<i32: 1>} : vector<8x3xi32>
    %261 = vector.broadcast %243 : vector<8x1xi32> to vector<8x3xi32>
    %262 = arith.cmpi eq, %260, %261 : vector<8x3xi32>
    %263 = arith.extui %262 : vector<8x3xi1> to vector<8x3xi32>
    %264 = arith.sitofp %263 : vector<8x3xi32> to vector<8x3xf32>
    %cst_59 = arith.constant dense<0.000000e+00> : vector<8x52xf32>
    %265 = tpu.matmul %264, %125, %cst_59 {dimension_numbers = #tpu.dot_dimension_numbers<[1], [0], [0], [1], [0, 0, 1, 1], [], []>} : vector<8x3xf32>, vector<3x52xf32>, vector<8x52xf32> -> vector<8x52xf32>
    %266 = tpu.iota {dimensions = array<i32: 1>} : vector<3x16xi32>
    %267 = vector.broadcast %253 : vector<3x1xi32> to vector<3x16xi32>
    %268 = arith.cmpi eq, %266, %267 : vector<3x16xi32>
    %269 = arith.extui %268 : vector<3x16xi1> to vector<3x16xi32>
    %270 = arith.sitofp %269 : vector<3x16xi32> to vector<3x16xf32>
    %cst_60 = arith.constant dense<0.000000e+00> : vector<3x52xf32>
    %271 = tpu.matmul %270, %217, %cst_60 {dimension_numbers = #tpu.dot_dimension_numbers<[1], [0], [0], [1], [0, 0, 1, 1], [], []>} : vector<3x16xf32>, vector<16x52xf32>, vector<3x52xf32> -> vector<3x52xf32>
    %272 = arith.subf %218, %259 : vector<8x52xf32>
    %273 = arith.mulf %221, %272 : vector<8x52xf32>
    %274 = vector.shape_cast %273 : vector<8x52xf32> to vector<1x8x52xf32>
    %cst_61 = arith.constant dense<0.000000e+00> : vector<1xf32>
    %275 = vector.multi_reduction <add>, %274, %cst_61 [1, 2] : vector<1x8x52xf32> to vector<1xf32>
    %276 = vector.shape_cast %275 : vector<1xf32> to vector<1x1x1xf32>
    %277 = vector.extract %276[0, 0, 0] : f32 from vector<1x1x1xf32>
    %278 = arith.subf %219, %265 : vector<8x52xf32>
    %279 = arith.mulf %222, %278 : vector<8x52xf32>
    %280 = vector.shape_cast %279 : vector<8x52xf32> to vector<1x8x52xf32>
    %cst_62 = arith.constant dense<0.000000e+00> : vector<1xf32>
    %281 = vector.multi_reduction <add>, %280, %cst_62 [1, 2] : vector<1x8x52xf32> to vector<1xf32>
    %282 = vector.shape_cast %281 : vector<1xf32> to vector<1x1x1xf32>
    %283 = vector.extract %282[0, 0, 0] : f32 from vector<1x1x1xf32>
    %284 = arith.subf %125, %271 : vector<3x52xf32>
    %285 = arith.mulf %223, %284 : vector<3x52xf32>
    %286 = vector.shape_cast %285 : vector<3x52xf32> to vector<1x3x52xf32>
    %cst_63 = arith.constant dense<0.000000e+00> : vector<1xf32>
    %287 = vector.multi_reduction <add>, %286, %cst_63 [1, 2] : vector<1x3x52xf32> to vector<1xf32>
    %288 = vector.shape_cast %287 : vector<1xf32> to vector<1x1x1xf32>
    %289 = vector.extract %288[0, 0, 0] : f32 from vector<1x1x1xf32>
    %290 = tpu.iota {dimensions = array<i32: 1>} : vector<1x3xi32>
    %c0_i32_64 = arith.constant 0 : i32
    %291 = vector.broadcast %c0_i32_64 : i32 to vector<1x3xi32>
    %292 = arith.cmpi eq, %290, %291 : vector<1x3xi32>
    %cst_65 = arith.constant 0.000000e+00 : f32
    %293 = vector.broadcast %277 : f32 to vector<1x3xf32>
    %294 = vector.broadcast %cst_65 : f32 to vector<1x3xf32>
    %295 = arith.select %292, %293, %294 : vector<1x3xi1>, vector<1x3xf32>
    %c1_i32_66 = arith.constant 1 : i32
    %296 = vector.broadcast %c1_i32_66 : i32 to vector<1x3xi32>
    %297 = arith.cmpi eq, %290, %296 : vector<1x3xi32>
    %cst_67 = arith.constant 0.000000e+00 : f32
    %298 = vector.broadcast %283 : f32 to vector<1x3xf32>
    %299 = vector.broadcast %cst_67 : f32 to vector<1x3xf32>
    %300 = arith.select %297, %298, %299 : vector<1x3xi1>, vector<1x3xf32>
    %301 = arith.addf %295, %300 : vector<1x3xf32>
    %c2_i32_68 = arith.constant 2 : i32
    %302 = vector.broadcast %c2_i32_68 : i32 to vector<1x3xi32>
    %303 = arith.cmpi eq, %290, %302 : vector<1x3xi32>
    %cst_69 = arith.constant 0.000000e+00 : f32
    %304 = vector.broadcast %289 : f32 to vector<1x3xf32>
    %305 = vector.broadcast %cst_69 : f32 to vector<1x3xf32>
    %306 = arith.select %303, %304, %305 : vector<1x3xi1>, vector<1x3xf32>
    %307 = arith.addf %301, %306 : vector<1x3xf32>
    %c0_70 = arith.constant 0 : index
    %c0_71 = arith.constant 0 : index
    %c0_72 = arith.constant 0 : index
    %308 = vector.load %arg4[%c0_70, %c0_71, %c0_72] : memref<1x1x3xf32, #tpu.memory_space<vmem>>, vector<1x1x3xf32>
    %309 = vector.shape_cast %308 : vector<1x1x3xf32> to vector<1x3xf32>
    %310 = vector.shape_cast %307 : vector<1x3xf32> to vector<1x1x3xf32>
    tpu.vector_store %arg4[%c0_70, %c0_71, %c0_72], %310 {strides = array<i32>} : memref<1x1x3xf32, #tpu.memory_space<vmem>>, vector<1x1x3xf32>,
    return
  }
  func.func @transform_0(%arg0: i32, %arg1: memref<2x3xi32, #tpu.memory_space<smem>>) -> (i32, i32, i32) {
    %c0_i32 = arith.constant 0 : i32
    %c0_i32_0 = arith.constant 0 : i32
    %c0_i32_1 = arith.constant 0 : i32
    return %arg0, %c0_i32, %c0_i32_0 : i32, i32, i32
  }
  func.func @transform_1(%arg0: i32, %arg1: memref<2x3xi32, #tpu.memory_space<smem>>) -> (i32, i32, i32) {
    %c0_i32 = arith.constant 0 : i32
    %c0_i32_0 = arith.constant 0 : i32
    %c0_i32_1 = arith.constant 0 : i32
    return %arg0, %c0_i32, %c0_i32_0 : i32, i32, i32
  }
  func.func @transform_2(%arg0: i32, %arg1: memref<2x3xi32, #tpu.memory_space<smem>>) -> (i32, i32, i32) {
    %c0_i32 = arith.constant 0 : i32
    %c0_i32_0 = arith.constant 0 : i32
    %c0_i32_1 = arith.constant 0 : i32
    return %arg0, %c0_i32, %c0_i32_0 : i32, i32, i32
  }
}

</mosaic_0001>

<bundles_post_ra>
// kernel: consistency_loss.1
= control target key start
LH: loop header
LB: loop body
LE: loop exit
PB: predicated region body
PF: predicated region fallthrough
CT: control target
= control target key end

     0   :  { %s1579_s0 = inlined_call_operand.vmem [shape: s32[2,3], index: 0, kind: input, shape index: {}]   ;;  %s1580_s1 = inlined_call_operand.vmem [shape: f32[2,8,52], index: 1, kind: input, shape index: {}]   ;;  %s1581_s2 = inlined_call_operand.vmem [shape: f32[2,16,52], index: 2, kind: input, shape index: {}]   ;;  %s1582_s3 = inlined_call_operand.vmem [shape: f32[2,1,3], index: 3, kind: output, shape index: {}]  }
   0x1   :  { %s8_s14 = sshll.u32 %s1579_s0, 4  ;;  %s9_s14 = int_to_ptr.vmem [resolvable:$true] %s8_s14 }
   0x2   :  { %s1261_s15 = scalar_lea.vmem %s9_s14, 32  ;;  %p1266_p1 = scmp.lt.s32.totalorder %s9_s14, %s9_s14 }
   0x3   :  { %p1262_p0 = scmp.ne.s32.totalorder %s9_s14, %s1261_s15  ;;  %p1267_p2 = scmp.lt.s32.totalorder %s1261_s15, %s1261_s15 }
   0x5   :  { %p1268_p3 = por %p1267_p2, %p1266_p1 }
   0x7   :  { %p1269_p4 = pnand %p1268_p3, %p1262_p0 }
   0x9   :  { %1272 = shalt.err (!%p1269_p4)  }
   0xa   :  { %s1283_s16 = smov [#allocation3]  }
   0xb   :  { %11 = dma.vmem_to_smem %s9_s14, 32, %s1283_s16, [#allocation2] }
   0xc   :  { %1277 = dma.done.wait [#allocation2], 32 }
   0xd   :  { %1278 = vsyncadd [#allocation2], 4294967264 }
   0xe   :  { %13 = sfence }
   0xf   :  { %s1310_s17 = smov 0  }
  0x10 LB: > { %s1110_s0 = sadd.s32 4294967295, %s1281_s17   ;;  %p1114_p5 = scmp.ge.s32.totalorder %s1281_s17, 1  ;;  %s1281_s17 = sphi %s1310_s17, %s19_s17  }
  0x11   : > { %p128_p6 = scmp.lt.s32.totalorder %s1281_s17, 3 }
  0x13   : > { %p129_p7 = pnand %p1114_p5, %p128_p6 }
  0x14   : > { %p152_p8 = scmp.lt.s32.totalorder (!%p129_p7), %s1110_s0, 1  ;;  %v164_v0 = vlaneseq (!%p129_p7)  ;;  %s1118_s18 = sshll.u32 (!%p129_p7), %s1110_s0, 7  ;;  %v1284_v1 = vmov (!%p129_p7), 0.0   ;;  %vm1285_vm0 = vmmov (!%p129_p7), 0   ;;  %vm355_vm1 = vcmask (!%p129_p7), 424960  }
  0x15   : > { %132 = sbr.rel (%p129_p7) target bundleno = 1690 (0x69a), region = 28  ;;  %1161 = vmatprep.subr.mxu0 (!%p129_p7), %v1284_v1  ;;  %1163 = vmatprep.mubr.msk.f32.mxu0 (!%p129_p7), %vm1285_vm0, %v1284_v1  ;;  %s170_s19 = sld [smem:[#allocation3 + %s1118_s18]] (!%p129_p7) }
  0x16   : > { %s178_s20 = sadd.s32 (!%p129_p7), 1, %s1118_s18  ;;  %v165_v2 = vshrl.u32 (!%p129_p7), %v164_v0, 7  ;;  %1166 = vmatprep.subr.mxu1 (!%p129_p7), %v1284_v1  ;;  %1168 = vmatprep.mubr.msk.f32.mxu1 (!%p129_p7), %vm1285_vm0, %v1284_v1  ;;  %v1326_v3 = vand.u32 (!%p129_p7), 127, %v164_v0  ;;  %s187_s22 = sadd.s32 (!%p129_p7), 2, %s1118_s18 }
  0x17   : > { %s1328_s21 = sld [smem:[#allocation3 + %s178_s20]] (!%p129_p7) }
  0x18   : > { %s1331_s24 = sld [smem:[#allocation3 + %s187_s22]] (!%p129_p7)  ;;  %vm271_vm2 = vcmp.lt.s32.totalorder (!%p129_p7), %v1326_v3, 16  ;;  %vm276_vm3 = vcmp.ge.s32.totalorder (!%p129_p7), %v1326_v3, 32  ;;  %vm277_vm4 = vcmp.lt.s32.totalorder (!%p129_p7), %v1326_v3, 48  ;;  %vm273_vm5 = vcmp.ge.s32.totalorder (!%p129_p7), %v1326_v3, 16 }
  0x19   : > { %vm168_vm6 = vcmp.eq.s32.totalorder (!%p129_p7), %v165_v2, 0  ;;  %vm1346_vm7 = vmand (!%p129_p7), %vm276_vm3, %vm277_vm4  ;;  %vm274_vm8 = vcmp.lt.s32.totalorder (!%p129_p7), %v1326_v3, 32  ;;  %vm279_vm9 = vcmp.ge.s32.totalorder (!%p129_p7), %v1326_v3, 48  ;;  %vm280_vm10 = vcmp.lt.s32.totalorder (!%p129_p7), %v1326_v3, 52 }
  0x1a   : > { %vm177_vm11 = vcmp.eq.s32.totalorder (!%p129_p7), %v165_v2, 1  ;;  %vm1354_vm12 = vmand (!%p129_p7), %vm273_vm5, %vm274_vm8  ;;  %vm186_vm14 = vcmp.eq.s32.totalorder (!%p129_p7), %v165_v2, 2  ;;  %v1406_v33 = vsel (!%p129_p7), %vm271_vm2, 1.0, %v1284_v1  ;;  %v1418_v39 = vsel (!%p129_p7), %vm1346_vm7, 1.0, %v1284_v1 }
  0x1b   : > { %v171_v6 = vstv (!%p129_p7), %s170_s19  ;;  %vm1363_vm15 = vmand (!%p129_p7), %vm279_vm9, %vm280_vm10  ;;  %vm196_vm9 = vcmask (!%p129_p7), 64512   ;;  %v1411_v34 = vsel (!%p129_p7), %vm1354_vm12, 1.0, %v1284_v1  ;;  %vm291_vm10 = vcmask (!%p129_p7), 419840  }
  0x1c   : > { %s1590_s0 = smov (!%p152_p8, %s1110_s0), 1  ;;  %vm172_vm13 = vcmp.eq.s32.totalorder %v1326_v3, %v171_v6  ;;  %v1424_v42 = vsel %vm1363_vm15, 1.0, %v1284_v1 }
  0x1d   : > { %s1115_s23 = sshll.u32 %s1590_s0, 3  ;;  %s1144_s28 = sshll.u32 %s1590_s0, 4  ;;  %vm173_vm3 = vmand %vm168_vm6, %vm172_vm13  ;;  %v180_v12 = vstv %s1328_s21 }
  0x1e   : > { %s155_s27 = scalar_lea.vmem %s1580_s1, %s1115_s23  ;;  %s1344_s4 = scalar_lea.vmem %s1581_s2, %s1144_s28  ;;  %v1119_v16 = vsel %vm173_vm3, 1.0, %v1284_v1  ;;  %vm181_vm4 = vcmp.eq.s32.totalorder %v1326_v3, %v180_v12  ;;  %v189_v17 = vstv %s1331_s24 }
  0x1f   : > { %v195_v4 = vld [vmem:[%s155_s27] sm:$0xff]  ;;  %vm182_vm5 = vmand %vm177_vm11, %vm181_vm4  ;;  %vm190_vm6 = vcmp.eq.s32.totalorder %v1326_v3, %v189_v17  ;;  %v1389_v25 = vld [vmem:[%s1344_s4 + $0x8] sm:$0xff]  ;;  %vm556_vm11 = vcmask 23552   ;;  %s163_s10 = scalar_lea.vmem %s1582_s3, %s1590_s0 }
  0x20   : > { %1162 = vmatpush3.msra.mxu0 %v195_v4  ;;  %v351_v7 = vld [vmem:[%s1344_s4] sm:$0xff]  ;;  %v1120_v20 = vsel %vm182_vm5, 1.0, %v1284_v1  ;;  %vm191_vm8 = vmand %vm186_vm14, %vm190_vm6  ;;  %v354_v26 = vsel %vm271_vm2, %v1389_v25, -1e+30  ;;  %v367_v27 = vsel %vm1354_vm12, %v1389_v25, -1e+30 }
  0x21   : > { %v353_v9 = vsel %vm271_vm2, %v351_v7, -1e+30  ;;  %v378_v10 = vsel %vm1346_vm7, %v351_v7, -1e+30  ;;  %1171 = vmatprep.subr.mxu0 %v1284_v1  ;;  %v366_v15 = vsel %vm1354_vm12, %v351_v7, -1e+30  ;;  %v185_v22 = vadd.f32 %v1120_v20, %v1119_v16 }
  0x22   : > { %v356_v13 = vsel %vm355_vm1, %v353_v9, -inf  ;;  %v380_v14 = vsel %vm355_vm1, %v378_v10, -inf  ;;  %v368_v18 = vsel %vm355_vm1, %v366_v15, -inf  ;;  %v390_v19 = vsel %vm1363_vm15, %v351_v7, -1e+30 }
  0x23   : > { %357 = vmax.xlane.f32.xlu0 %v356_v13  ;;  %381 = vmax.xlane.f32.xlu1 %v380_v14  ;;  %v392_v21 = vsel %vm355_vm1, %v390_v19, -inf  ;;  %v1121_v23 = vsel %vm191_vm8, 1.0, %v1284_v1  ;;  %v379_v28 = vsel %vm1346_vm7, %v1389_v25, -1e+30  ;;  %v359_v29 = vsel %vm355_vm1, %v354_v26, -inf }
  0x24   : > { %v194_v24 = vadd.f32 %v1121_v23, %v185_v22  ;;  %v371_v30 = vsel %vm355_vm1, %v367_v27, -inf  ;;  %v383_v31 = vsel %vm355_vm1, %v379_v28, -inf  ;;  %v391_v50 = vsel %vm1363_vm15, %v1389_v25, -1e+30 }
  0x25   : > { %v395_v58 = vsel %vm355_vm1, %v391_v50, -inf  ;;  %vm928_vm8 = vcmask 130048  }
  0x26   : > { %1164 = vmatmul.mubr.msk.f32.vlgmr.msra.gmra.mrb[0].mxu0 %vm196_vm9, %v194_v24 }
  0x27   : > { %369 = vmax.xlane.f32.xlu0 %v368_v18  ;;  %393 = vmax.xlane.f32.xlu1 %v392_v21 }
  0x28   : > { %1173 = vmatprep.mubr.msk.f32.mxu0 %vm1285_vm0, %v1284_v1 }
  0x2b   : > { %360 = vmax.xlane.f32.xlu0 %v359_v29  ;;  %372 = vmax.xlane.f32.xlu1 %v371_v30 }
  0x2f   : > { %384 = vmax.xlane.f32.xlu0 %v383_v31 }
  0xb0   : > { %v358_v32 = vpop.xlane.xlu0 %357  ;;  %v382_v36 = vpop.xlane.xlu1 %381 }
  0xb1   : > { %v362_v37 = vmul.f32 %v1406_v33, %v358_v32  ;;  %v386_v40 = vmul.f32 %v1418_v39, %v382_v36 }
  0xb4   : > { %v370_v35 = vpop.xlane.xlu0 %369  ;;  %v394_v43 = vpop.xlane.xlu1 %393 }
  0xb5   : > { %v374_v38 = vmul.f32 %v1411_v34, %v370_v35  ;;  %v398_v45 = vmul.f32 %v1424_v42, %v394_v43 }
  0xb7   : > { %v376_v41 = vadd.f32 %v374_v38, %v362_v37 }
  0xb8   : > { %v361_v8 = vpop.xlane.xlu0 %360  ;;  %v373_v9 = vpop.xlane.xlu1 %372 }
  0xb9   : > { %v388_v44 = vadd.f32 %v386_v40, %v376_v41  ;;  %v363_v11 = vmul.f32 %v1406_v33, %v361_v8  ;;  %v375_v12 = vmul.f32 %v1411_v34, %v373_v9 }
  0xbb   : > { %v400_v46 = vadd.f32 %v398_v45, %v388_v44  ;;  %v377_v15 = vadd.f32 %v375_v12, %v363_v11 }
  0xbc   : > { %v385_v10 = vpop.xlane.xlu0 %384 }
  0xbd   : > { %v1427_v47 = vsub.f32 %v351_v7, %v400_v46  ;;  %v387_v16 = vmul.f32 %v1418_v39, %v385_v10 }
  0xbf   : > { %v404_v48 = vmul.f32 1.442695, %v1427_v47  ;;  %v389_v21 = vadd.f32 %v387_v16, %v377_v15 }
  0xc1   : > { %1225 = vpow2.f32 %v404_v48 }
  0xcb   : > { %v1226_v51 = vpop.eup %1225 }
  0xcc   : > { %v408_v59 = vmul.f32 %v1226_v51, %v1406_v33  ;;  %v424_v63 = vmul.f32 %v1226_v51, %v1411_v34  ;;  %v440_v0 = vmul.f32 %v1226_v51, %v1418_v39  ;;  %v456_v6 = vmul.f32 %v1226_v51, %v1424_v42 }
  0xce   : > { %v410_v62 = vsel %vm355_vm1, %v408_v59, 0.0  ;;  %v426_v4 = vsel %vm355_vm1, %v424_v63, 0.0  ;;  %v442_v5 = vsel %vm355_vm1, %v440_v0, 0.0  ;;  %v458_v7 = vsel %vm355_vm1, %v456_v6, 0.0 }
  0xf9   : > { %v266_v49 = vpop.f32.mrb[0].mxu0 }
  0xfa   : > { %v1165_v52 = vpop.f32.mrb[1].mxu0  ;;  %v297_v53 = vsel %vm1354_vm12, %v266_v49, -1e+30  ;;  %v290_v54 = vsel %vm271_vm2, %v266_v49, -1e+30  ;;  %vm1202_vm2 = vmpackc.low %vm355_vm1, %vm355_vm1  ;;  %vm749_vm12 = vcmask 124928  }
  0xfb   : > { %v298_v55 = vsel %vm291_vm10, %v297_v53, -inf  ;;  %v292_v56 = vsel %vm291_vm10, %v290_v54, -inf  ;;  %v303_v57 = vsel %vm1346_vm7, %v266_v49, -1e+30  ;;  %v309_v61 = vsel %vm1363_vm15, %v266_v49, -1e+30 }
  0xfc   : > { %299 = vmax.xlane.f32.xlu1 %v298_v55  ;;  %293 = vmax.xlane.f32.xlu0 %v292_v56  ;;  %v304_v60 = vsel %vm291_vm10, %v303_v57, -inf  ;;  %v310_v2 = vsel %vm291_vm10, %v309_v61, -inf  ;;  %vm776_vm7 = vcmask 1042432  }
 0x100   : > { %305 = vmax.xlane.f32.xlu1 %v304_v60  ;;  %396 = vmax.xlane.f32.xlu0 %v395_v58 }
 0x104   : > { %311 = vmax.xlane.f32.xlu1 %v310_v2  ;;  %411 = vadd.xlane.f32.xlu0 %v410_v62 }
 0x108   : > { %427 = vadd.xlane.f32.xlu1 %v426_v4  ;;  %443 = vadd.xlane.f32.xlu0 %v442_v5 }
 0x10c   : > { %459 = vadd.xlane.f32.xlu1 %v458_v7 }
 0x189   : > { %v300_v13 = vpop.xlane.xlu1 %299  ;;  %v294_v14 = vpop.xlane.xlu0 %293 }
 0x18a   : > { %v301_v17 = vmul.f32 %v1411_v34, %v300_v13  ;;  %v295_v18 = vmul.f32 %v1406_v33, %v294_v14 }
 0x18c   : > { %v302_v24 = vadd.f32 %v301_v17, %v295_v18 }
 0x18d   : > { %v306_v19 = vpop.xlane.xlu1 %305  ;;  %v397_v20 = vpop.xlane.xlu0 %396 }
 0x18e   : > { %v307_v22 = vmul.f32 %v1418_v39, %v306_v19  ;;  %v399_v23 = vmul.f32 %v1424_v42, %v397_v20 }
 0x190   : > { %v401_v26 = vadd.f32 %v399_v23, %v389_v21  ;;  %v308_v28 = vadd.f32 %v307_v22, %v302_v24 }
 0x191   : > { %v312_v27 = vpop.xlane.xlu1 %311  ;;  %v412_v57 = vpop.xlane.xlu0 %411 }
 0x192   : > { %v1462_v29 = vsub.f32 %v1389_v25, %v401_v26  ;;  %v313_v30 = vmul.f32 %v1424_v42, %v312_v27 }
 0x194   : > { %v406_v31 = vmul.f32 1.442695, %v1462_v29  ;;  %v314_v32 = vadd.f32 %v313_v30, %v308_v28 }
 0x195   : > { %v428_v58 = vpop.xlane.xlu1 %427  ;;  %v444_v59 = vpop.xlane.xlu0 %443 }
 0x196   : > { %1227 = vpow2.f32 %v406_v31  ;;  %v1466_v35 = vsub.f32 %v266_v49, %v314_v32 }
 0x198   : > { %v316_v36 = vmul.f32 1.442695, %v1466_v35 }
 0x199   : > { %v460_v60 = vpop.xlane.xlu1 %459 }
 0x19a   : > { %1229 = vpow2.f32 %v316_v36 }
 0x19b   : > { %1231 = vlog2.f32 %v412_v57 }
 0x19c   : > { %1233 = vlog2.f32 %v428_v58 }
 0x19d   : > { %1235 = vlog2.f32 %v444_v59 }
 0x19e   : > { %1237 = vlog2.f32 %v460_v60 }
 0x1a0   : > { %v1228_v37 = vpop.eup %1227 }
 0x1a1   : > { %v425_v38 = vmul.f32 %v1228_v37, %v1411_v34  ;;  %v409_v40 = vmul.f32 %v1228_v37, %v1406_v33  ;;  %v441_v43 = vmul.f32 %v1228_v37, %v1418_v39  ;;  %v457_v54 = vmul.f32 %v1228_v37, %v1424_v42 }
 0x1a3   : > { %v429_v41 = vsel %vm355_vm1, %v425_v38, 0.0  ;;  %v413_v25 = vsel %vm355_vm1, %v409_v40, 0.0  ;;  %v445_v48 = vsel %vm355_vm1, %v441_v43, 0.0  ;;  %v461_v56 = vsel %vm355_vm1, %v457_v54, 0.0 }
 0x1a4   : > { %v1230_v44 = vpop.eup %1229  ;;  %430 = vadd.xlane.f32.xlu1 %v429_v41  ;;  %414 = vadd.xlane.f32.xlu0 %v413_v25 }
 0x1a5   : > { %v326_v45 = vmul.f32 %v1230_v44, %v1411_v34  ;;  %v334_v49 = vmul.f32 %v1230_v44, %v1418_v39  ;;  %v318_v50 = vmul.f32 %v1230_v44, %v1406_v33  ;;  %v342_v53 = vmul.f32 %v1230_v44, %v1424_v42  ;;  %v1232_v61 = vpop.eup %1231 }
 0x1a6   : > { %v1234_v62 = vpop.eup %1233  ;;  %v417_v63 = vmul.f32 0.6931472, %v1232_v61 }
 0x1a7   : > { %v327_v46 = vsel %vm291_vm10, %v326_v45, 0.0  ;;  %v335_v51 = vsel %vm291_vm10, %v334_v49, 0.0  ;;  %v319_v52 = vsel %vm291_vm10, %v318_v50, 0.0  ;;  %v343_v55 = vsel %vm291_vm10, %v342_v53, 0.0  ;;  %v1236_v2 = vpop.eup %1235 }
 0x1a8   : > { %328 = vadd.xlane.f32.xlu1 %v327_v46  ;;  %446 = vadd.xlane.f32.xlu0 %v445_v48  ;;  %v433_v0 = vmul.f32 0.6931472, %v1234_v62  ;;  %v420_v4 = vmul.f32 %v1406_v33, %v417_v63  ;;  %v449_v6 = vmul.f32 0.6931472, %v1236_v2  ;;  %v1238_v9 = vpop.eup %1237 }
 0x1a9   : > { %v465_v12 = vmul.f32 0.6931472, %v1238_v9 }
 0x1aa   : > { %v436_v5 = vmul.f32 %v1411_v34, %v433_v0  ;;  %v452_v11 = vmul.f32 %v1418_v39, %v449_v6 }
 0x1ab   : > { %v468_v16 = vmul.f32 %v1424_v42, %v465_v12 }
 0x1ac   : > { %336 = vadd.xlane.f32.xlu1 %v335_v51  ;;  %320 = vadd.xlane.f32.xlu0 %v319_v52  ;;  %v438_v10 = vadd.f32 %v436_v5, %v420_v4 }
 0x1ae   : > { %v454_v15 = vadd.f32 %v452_v11, %v438_v10 }
 0x1b0   : > { %344 = vadd.xlane.f32.xlu1 %v343_v55  ;;  %462 = vadd.xlane.f32.xlu0 %v461_v56  ;;  %v470_v19 = vadd.f32 %v468_v16, %v454_v15 }
 0x1b2   : > { %v1490_v27 = vsub.f32 %v1427_v47, %v470_v19 }
 0x1b4   : > { %v474_v38 = vmul.f32 1.442695, %v1490_v27 }
 0x231   : > { %v431_v7 = vpop.xlane.xlu1 %430  ;;  %v415_v8 = vpop.xlane.xlu0 %414 }
 0x232   : > { %1239 = vlog2.f32 %v431_v7 }
 0x233   : > { %1241 = vlog2.f32 %v415_v8 }
 0x235   : > { %v329_v13 = vpop.xlane.xlu1 %328  ;;  %v447_v14 = vpop.xlane.xlu0 %446 }
 0x236   : > { %1243 = vlog2.f32 %v329_v13 }
 0x237   : > { %1245 = vlog2.f32 %v447_v14 }
 0x239   : > { %v337_v17 = vpop.xlane.xlu1 %336  ;;  %v321_v18 = vpop.xlane.xlu0 %320 }
 0x23a   : > { %1247 = vlog2.f32 %v337_v17 }
 0x23b   : > { %1249 = vlog2.f32 %v321_v18 }
 0x23c   : > { %v1240_v22 = vpop.eup %1239 }
 0x23d   : > { %v345_v20 = vpop.xlane.xlu1 %344  ;;  %v463_v21 = vpop.xlane.xlu0 %462  ;;  %v435_v28 = vmul.f32 0.6931472, %v1240_v22 }
 0x23e   : > { %1251 = vlog2.f32 %v345_v20  ;;  %v1242_v23 = vpop.eup %1241 }
 0x23f   : > { %1253 = vlog2.f32 %v463_v21  ;;  %v419_v30 = vmul.f32 0.6931472, %v1242_v23  ;;  %v437_v40 = vmul.f32 %v1411_v34, %v435_v28 }
 0x240   : > { %v1244_v24 = vpop.eup %1243  ;;  %1255 = vpow2.f32 %v474_v38 }
 0x241   : > { %v1246_v26 = vpop.eup %1245  ;;  %v331_v32 = vmul.f32 0.6931472, %v1244_v24  ;;  %v421_v41 = vmul.f32 %v1406_v33, %v419_v30 }
 0x242   : > { %v451_v36 = vmul.f32 0.6931472, %v1246_v26 }
 0x243   : > { %v332_v45 = vmul.f32 %v1411_v34, %v331_v32  ;;  %v439_v50 = vadd.f32 %v437_v40, %v421_v41 }
 0x244   : > { %v1248_v31 = vpop.eup %1247  ;;  %v453_v47 = vmul.f32 %v1418_v39, %v451_v36 }
 0x245   : > { %v1250_v37 = vpop.eup %1249  ;;  %v339_v25 = vmul.f32 0.6931472, %v1248_v31 }
 0x246   : > { %v323_v43 = vmul.f32 0.6931472, %v1250_v37  ;;  %v455_v55 = vadd.f32 %v453_v47, %v439_v50 }
 0x247   : > { %v340_v51 = vmul.f32 %v1418_v39, %v339_v25 }
 0x248   : > { %v1252_v44 = vpop.eup %1251  ;;  %v324_v46 = vmul.f32 %v1406_v33, %v323_v43 }
 0x249   : > { %v1254_v48 = vpop.eup %1253  ;;  %v347_v49 = vmul.f32 0.6931472, %v1252_v44 }
 0x24a   : > { %v333_v52 = vadd.f32 %v332_v45, %v324_v46  ;;  %v467_v53 = vmul.f32 0.6931472, %v1254_v48  ;;  %v1513_v61 = vpop.eup %1255 }
 0x24b   : > { %v348_v54 = vmul.f32 %v1424_v42, %v347_v49 }
 0x24c   : > { %v341_v56 = vadd.f32 %v340_v51, %v333_v52  ;;  %v469_v57 = vmul.f32 %v1424_v42, %v467_v53  ;;  %v1286_v42 = vmov 0.0|0.0  }
 0x24e   : > { %v349_v58 = vadd.f32 %v348_v54, %v341_v56  ;;  %v471_v34 = vadd.f32 %v469_v57, %v455_v55 }
 0x250   : > { %v1502_v59 = vsub.f32 %v1466_v35, %v349_v58  ;;  %v1505_v33 = vsub.f32 %v1462_v29, %v471_v34 }
 0x252   : > { %v478_v60 = vmul.f32 1.442695, %v1502_v59  ;;  %v476_v39 = vmul.f32 1.442695, %v1505_v33  ;;  %1167 = vmatpush3.xpose.msk.msra.mxu1 %vm355_vm1, %v1502_v59  ;;  %1172 = vmatpush3.xpose.msk.msra.mxu0 %vm355_vm1, %v1502_v59  ;;  %v1201_v29 = vpack.c.bf16 %v1505_v33, %v1490_v27 }
 0x253   : > { %1200 = vmatprep.subr.bf16.mxu1 %v1286_v42  ;;  %1183 = vmatprep.subr.mxu0 %v1284_v1 }
 0x254   : > { %1257 = vpow2.f32 %v478_v60 }
 0x255   : > { %1259 = vpow2.f32 %v476_v39  ;;  %1169 = vmatmul.mubr.msk.f32.vlgmr.msra.gmra.mrb[0].mxu1 %vm355_vm1, %v1513_v61 }
 0x256   : > { %1203 = vmatpush3.bf16.xpose.msk.msra.mxu1 %vm1202_vm2, %v1201_v29  ;;  %1180 = vmatprep.mubr.msk.f32.mxu1 %vm1285_vm0, %v1284_v1 }
 0x257   : > { %1204 = vmatprep.subr.bf16.mxu1 %v1286_v42 }
 0x25e   : > { %v1524_v35 = vpop.eup %1257 }
 0x25f   : > { %v1526_v62 = vpop.eup %1259  ;;  %1181 = vmatmul.mubr.msk.f32.vlgmr.msra.gmra.mrb[2].mxu1 %vm355_vm1, %v1524_v35 }
 0x260   : > { %1174 = vmatmul.mubr.msk.f32.vlgmr.msra.gmra.mrb[2].mxu0 %vm355_vm1, %v1526_v62  ;;  %1206 = vmatpush3.bf16.msra.mxu1 %v1201_v29 }
 0x261   : > { %1184 = vmatpush3.msk.msra.mxu0 %vm776_vm7, %v1502_v59  ;;  %1185 = vmatprep.mubr.msk.f32.mxu0 %vm1285_vm0, %v1284_v1 }
 0x262   : > { %1188 = vmatprep.subr.mxu0 %v1284_v1  ;;  %1197 = vmatprep.mubr.msk.f32.mxu1 %vm1285_vm0, %v1284_v1 }
 0x328   : > { %v552_v63 = vpop.f32.mrb[0].mxu1 }
 0x329   : > { %v1170_v0 = vpop.f32.mrb[1].mxu1  ;;  %v557_v2 = vsel %vm556_vm11, %v552_v63, -inf }
 0x32a   : > { %558 = vmax.xlane.f32.xlu0 %v557_v2 }
 0x332   : > { %v745_v4 = vpop.f32.mrb[2].mxu1 }
 0x333   : > { %v646_v5 = vpop.f32.mrb[2].mxu0  ;;  %v1182_v6 = vpop.f32.mrb[3].mxu1  ;;  %v750_v7 = vsel %vm749_vm12, %v745_v4, -inf }
 0x334   : > { %v1175_v8 = vpop.f32.mrb[3].mxu0  ;;  %751 = vmax.xlane.f32.xlu0 %v750_v7  ;;  %v650_v9 = vsel %vm556_vm11, %v646_v5, -inf }
 0x335   : > { %651 = vmax.xlane.f32.xlu1 %v650_v9 }
 0x3b7   : > { %v559_v10 = vpop.xlane.xlu0 %558 }
 0x3b8   : > { %vm560_vm13 = vcmp.eq.f32.partialorder %v552_v63, %v559_v10 }
 0x3b9   : > { %v561_v11 = vsel %vm560_vm13, %v1326_v3, 3 }
 0x3ba   : > { %v562_v12 = vsel %vm556_vm11, %v561_v11, 2147483647 }
 0x3bb   : > { %v564_v13 = vshra.s32 %v562_v12, 16  ;;  %v563_v26 = vand.u32 65535, %v562_v12 }
 0x3bd   : > { %v566_v14 = vcvt.s32.f32 %v564_v13  ;;  %v565_v30 = vcvt.s32.f32 %v563_v26 }
 0x3bf   : > { %567 = vmin.xlane.f32.xlu1 %v566_v14 }
 0x3c1   : > { %v752_v15 = vpop.xlane.xlu0 %751 }
 0x3c2   : > { %vm753_vm14 = vcmp.eq.f32.partialorder %v745_v4, %v752_v15  ;;  %v652_v16 = vpop.xlane.xlu1 %651 }
 0x3c3   : > { %v754_v17 = vsel %vm753_vm14, %v1326_v3, 16  ;;  %vm653_vm15 = vcmp.eq.f32.partialorder %v646_v5, %v652_v16 }
 0x3c4   : > { %v755_v18 = vsel %vm749_vm12, %v754_v17, 2147483647  ;;  %v654_v19 = vsel %vm653_vm15, %v1326_v3, 3 }
 0x3c5   : > { %v655_v20 = vsel %vm556_vm11, %v654_v19, 2147483647  ;;  %v757_v21 = vshra.s32 %v755_v18, 16  ;;  %v756_v32 = vand.u32 65535, %v755_v18 }
 0x3c6   : > { %v657_v22 = vshra.s32 %v655_v20, 16  ;;  %v656_v36 = vand.u32 65535, %v655_v20 }
 0x3c7   : > { %v759_v23 = vcvt.s32.f32 %v757_v21  ;;  %v758_v38 = vcvt.s32.f32 %v756_v32 }
 0x3c8   : > { %v659_v24 = vcvt.s32.f32 %v657_v22  ;;  %v658_v41 = vcvt.s32.f32 %v656_v36 }
 0x3c9   : > { %760 = vmin.xlane.f32.xlu1 %v759_v23 }
 0x3ca   : > { %660 = vmin.xlane.f32.xlu0 %v659_v24 }
 0x44c   : > { %v568_v28 = vpop.xlane.xlu1 %567 }
 0x44d   : > { %vm569_vm3 = vcmp.eq.f32.partialorder %v566_v14, %v568_v28  ;;  %v574_v44 = vcvt.f32.s32 %v568_v28 }
 0x44e   : > { %v570_v31 = vsel %vm569_vm3, %v565_v30, inf }
 0x44f   : > { %571 = vmin.xlane.f32.xlu0 %v570_v31  ;;  %v575_v47 = vshll.u32 %v574_v44, 16 }
 0x456   : > { %v761_v37 = vpop.xlane.xlu1 %760 }
 0x457   : > { %v661_v40 = vpop.xlane.xlu0 %660  ;;  %vm762_vm4 = vcmp.eq.f32.partialorder %v759_v23, %v761_v37  ;;  %v767_v50 = vcvt.f32.s32 %v761_v37 }
 0x458   : > { %vm662_vm5 = vcmp.eq.f32.partialorder %v659_v24, %v661_v40  ;;  %v763_v25 = vsel %vm762_vm4, %v758_v38, inf  ;;  %v667_v51 = vcvt.f32.s32 %v661_v40 }
 0x459   : > { %v663_v43 = vsel %vm662_vm5, %v658_v41, inf  ;;  %764 = vmin.xlane.f32.xlu0 %v763_v25  ;;  %v768_v53 = vshll.u32 %v767_v50, 16 }
 0x45a   : > { %664 = vmin.xlane.f32.xlu1 %v663_v43  ;;  %v668_v56 = vshll.u32 %v667_v51, 16 }
 0x4dc   : > { %v572_v45 = vpop.xlane.xlu0 %571 }
 0x4dd   : > { %v573_v46 = vcvt.f32.s32 %v572_v45 }
 0x4df   : > { %v576_v48 = vadd.s32 %v575_v47, %v573_v46 }
 0x4e1   : > { %vm770_vm6 = vcmp.eq.s32.totalorder %v1326_v3, %v576_v48 }
 0x4e2   : > { %v1134_v49 = vsel %vm770_vm6, 1.0, %v1284_v1 }
 0x4e3   : > { %1186 = vmatmul.mubr.msk.f32.vlgmr.msra.gmra.mrb[4].mxu0 %vm556_vm11, %v1134_v49 }
 0x4e4   : > { %1189 = vmatpush3.msk.msra.mxu0 %vm776_vm7, %v1502_v59  ;;  %1190 = vmatprep.mubr.msk.f32.mxu0 %vm1285_vm0, %v1284_v1  ;;  %vm1038_vm0 = vcmp.eq.s32.totalorder %v1326_v3, 0  ;;  %vm1049_vm7 = vcmask 16384  }
 0x4e6   : > { %v765_v52 = vpop.xlane.xlu0 %764 }
 0x4e7   : > { %v766_v54 = vcvt.f32.s32 %v765_v52  ;;  %v665_v55 = vpop.xlane.xlu1 %664 }
 0x4e8   : > { %v666_v57 = vcvt.f32.s32 %v665_v55 }
 0x4e9   : > { %v769_v58 = vadd.s32 %v768_v53, %v766_v54 }
 0x4ea   : > { %v669_v34 = vadd.s32 %v668_v56, %v666_v57 }
 0x4eb   : > { %vm925_vm9 = vcmp.eq.s32.totalorder %v1326_v3, %v769_v58 }
 0x4ec   : > { %v1140_v60 = vsel %vm925_vm9, 1.0, %v1284_v1  ;;  %vm849_vm2 = vcmp.eq.s32.totalorder %v1326_v3, %v669_v34 }
 0x4ed   : > { %v1137_v39 = vsel %vm849_vm2, 1.0, %v1284_v1  ;;  %1198 = vmatmul.mubr.msk.f32.vlgmr.msra.gmra.mrb[4].mxu1 %vm928_vm8, %v1140_v60 }
 0x4ee   : > { %1191 = vmatmul.mubr.msk.f32.vlgmr.msra.gmra.mrb[6].mxu0 %vm556_vm11, %v1137_v39 }
 0x5b6   : > { %v845_v42 = vpop.f32.mrb[4].mxu0 }
 0x5b7   : > { %v1002_v29 = vsub.f32 %v1490_v27, %v845_v42  ;;  %v1187_v63 = vpop.f32.mrb[5].mxu0 }
 0x5b9   : > { %v1003_v0 = vmul.f32 %v1513_v61, %v1002_v29 }
 0x5bb   : > { %v1004_v2 = vsel %vm355_vm1, %v1003_v0, 0.0 }
 0x5bc   : > { %1005 = vadd.xlane.f32.xlu1 %v1004_v2 }
 0x5c0   : > { %v998_v4 = vpop.f32.mrb[4].mxu1 }
 0x5c1   : > { %v921_v5 = vpop.f32.mrb[6].mxu0  ;;  %v1026_v6 = vsub.f32 %v1502_v59, %v998_v4  ;;  %v1199_v7 = vpop.f32.mrb[5].mxu1 }
 0x5c2   : > { %v1014_v8 = vsub.f32 %v1505_v33, %v921_v5  ;;  %v1192_v1 = vpop.f32.mrb[7].mxu0 }
 0x5c3   : > { %v1027_v9 = vmul.f32 %v1524_v35, %v1026_v6 }
 0x5c4   : > { %v1015_v10 = vmul.f32 %v1526_v62, %v1014_v8 }
 0x5c5   : > { %v1028_v27 = vsel %vm291_vm10, %v1027_v9, 0.0  ;;  %vm1045_vm10 = vcmp.eq.s32.totalorder %v1326_v3, 2 }
 0x5c6   : > { %1029 = vadd.xlane.f32.xlu1 %v1028_v27  ;;  %v1016_v61 = vsel %vm355_vm1, %v1015_v10, 0.0  ;;  %vm1041_vm1 = vcmp.eq.s32.totalorder %v1326_v3, 1 }
 0x5c7   : > { %1017 = vadd.xlane.f32.xlu0 %v1016_v61 }
 0x649   : > { %v1006_v11 = vpop.xlane.xlu1 %1005 }
 0x64a   : > { %v1007_v12 = vrot.slane %v1006_v11, 4 }
 0x64c   : > { %v1008_v13 = vadd.f32 %v1007_v12, %v1006_v11 }
 0x64e   : > { %v1009_v14 = vrot.slane %v1008_v13, 2 }
 0x650   : > { %v1010_v15 = vadd.f32 %v1009_v14, %v1008_v13 }
 0x652   : > { %v1011_v59 = vrot.slane %v1010_v15, 1 }
 0x653   : > { %v1030_v16 = vpop.xlane.xlu1 %1029 }
 0x654   : > { %v1031_v17 = vrot.slane %v1030_v16, 4  ;;  %v1018_v33 = vpop.xlane.xlu0 %1017  ;;  %v1012_v18 = vadd.f32 %v1011_v59, %v1010_v15 }
 0x655   : > { %v1019_v19 = vrot.slane %v1018_v33, 4 }
 0x656   : > { %v1032_v35 = vadd.f32 %v1031_v17, %v1030_v16  ;;  %1207 = vpush %v1012_v18 }
 0x657   : > { %v1020_v62 = vadd.f32 %v1019_v19, %v1018_v33 }
 0x658   : > { %v1033_v20 = vrot.slane %v1032_v35, 2 }
 0x659   : > { %v1021_v21 = vrot.slane %v1020_v62, 2 }
 0x65a   : > { %v1034_v22 = vadd.f32 %v1033_v20, %v1032_v35 }
 0x65b   : > { %v1022_v23 = vadd.f32 %v1021_v21, %v1020_v62 }
 0x65c   : > { %v1035_v24 = vrot.slane %v1034_v22, 1 }
 0x65d   : > { %v1023_v26 = vrot.slane %v1022_v23, 1 }
 0x65e   : > { %v1036_v28 = vadd.f32 %v1035_v24, %v1034_v22 }
 0x65f   : > { %v1024_v30 = vadd.f32 %v1023_v26, %v1022_v23 }
 0x661   : > { %1209 = vpush %v1024_v30 }
 0x662   : > { %1211 = vpush %v1036_v28 }
 0x687   : > { %s1208_s5 = spop %1207 }
 0x688   : > { %v1039_v31 = vstv %s1208_s5 }
 0x689   : > { %v1040_v36 = vsel %vm1038_vm0, %v1039_v31, 0.0 }
 0x692   : > { %s1210_s6 = spop %1209 }
 0x693   : > { %v1042_v32 = vstv %s1210_s6  ;;  %s1212_s7 = spop %1211 }
 0x694   : > { %v1043_v37 = vsel %vm1041_vm1, %v1042_v32, 0.0  ;;  %v1046_v38 = vstv %s1212_s7 }
 0x695   : > { %v1044_v40 = vadd.f32 %v1043_v37, %v1040_v36  ;;  %v1047_v41 = vsel %vm1045_vm10, %v1046_v38, 0.0 }
 0x697   : > { %v1048_v25 = vadd.f32 %v1047_v41, %v1044_v40 }
 0x699   : > { %1050 = vst.msk [vmem:[%s163_s10] sm:$0x1] %vm1049_vm7, %v1048_v25 }
 0x69a PF: > { %s19_s17 = sadd.s32 1, %s1281_s17  }
 0x69b   : > { %p16_p9 = scmp.ge.s32.totalorder %s19_s17, 4  }
 0x69d   :  { %18 = sbr.rel (!%p16_p9) target bundleno = 16 (0x10), region = 61 }

</bundles_post_ra>
